<compile_context>
chip_gen: v6e
topology: v6e:2x2x1
jax: 0.10.0
libtpu: 0.0.40
codegen_flags: <defaults>
</compile_context>

<pallas_src>
import jax
import jax.numpy as jnp
from jax.experimental import pallas as pl
from jax.experimental.pallas import tpu as pltpu

IN_DIM = 28 * 28   # 784
H1 = 200
H2 = 500
OUT_DIM = 10

# Lane-aligned (padded) widths used inside the kernel.
H1_PAD = 256
H2_PAD = 512
OUT_PAD = 128

TB_MAX = 1024  # maximum batch tile (rows per grid step)


def _mlp_kernel(x_ref, w1_ref, b1_ref, w2_ref, b2_ref, w3_ref, b3_ref, o_ref):
    # Layer 1: Linear(784 -> 256pad) + ReLU.  x is f32 in HBM/VMEM; cast to
    # bf16 in-kernel for a native-rate MXU matmul with f32 accumulation.
    x_bf16 = x_ref[...].astype(jnp.bfloat16)
    h1 = jnp.dot(x_bf16, w1_ref[...], preferred_element_type=jnp.float32)
    h1 = jnp.maximum(h1 + b1_ref[...], 0.0)

    # Dropout(p=0.5): identity in eval/inference mode.

    # Layer 2: Linear(256pad -> 512pad) + ReLU
    h2 = jnp.dot(h1.astype(jnp.bfloat16), w2_ref[...],
                 preferred_element_type=jnp.float32)
    h2 = jnp.maximum(h2 + b2_ref[...], 0.0)

    # Layer 3: Linear(512pad -> 128pad); store lane-dense bf16 logits tile.
    out = jnp.dot(h2.astype(jnp.bfloat16), w3_ref[...],
                  preferred_element_type=jnp.float32)
    o_ref[...] = (out + b3_ref[...]).astype(o_ref.dtype)


def _pad_to(a, shape):
    pads = [(0, t - s) for s, t in zip(a.shape, shape)]
    return jnp.pad(a, pads)


def _round_up(n, m):
    return ((n + m - 1) // m) * m


def prepare_params(w1, b1, w2, b2, w3, b3):
    """One-time (init-time) padding + bf16 cast of the weights/biases.

    wK: (in, out) f32 (already transposed vs PyTorch's (out, in));
    bK: (1, out) f32.  Padded lanes carry zeros so they contribute nothing.
    """
    w1_p = _pad_to(w1, (IN_DIM, H1_PAD)).astype(jnp.bfloat16)
    b1_p = _pad_to(b1, (1, H1_PAD)).astype(jnp.float32)
    w2_p = _pad_to(w2, (H1_PAD, H2_PAD)).astype(jnp.bfloat16)
    b2_p = _pad_to(b2, (1, H2_PAD)).astype(jnp.float32)
    w3_p = _pad_to(w3, (H2_PAD, OUT_PAD)).astype(jnp.bfloat16)
    b3_p = _pad_to(b3, (1, OUT_PAD)).astype(jnp.float32)
    return (w1_p, b1_p, w2_p, b2_p, w3_p, b3_p)


def net2_forward(x, params, *, tb_max=TB_MAX):
    """x: (B, 784) f32; params: output of prepare_params().
    Returns (B, 10) f32 logits."""
    w1_p, b1_p, w2_p, b2_p, w3_p, b3_p = params
    B = x.shape[0]

    # Adaptive batch tile:
    #  * capped at tb_max (512-1024 amortizes per-grid-step overhead),
    #  * rounded to the bf16 sublane multiple (16) so small batches are padded
    #    minimally instead of to a full max-size tile,
    #  * cdiv(B, 2) guarantees >= 2 grid steps when B > 16 so the "parallel"
    #    batch axis can shard across both TensorCores on v7x.
    tb = min(tb_max, max(16, _round_up(-(-B // 2), 16)))
    num_tiles = pl.cdiv(B, tb)
    b_pad = num_tiles * tb

    x_p = _pad_to(x, (b_pad, IN_DIM)) if b_pad != B else x

    def tiled(shape):
        # Batch-tiled operand: block index advances with the grid step.
        return pl.BlockSpec(shape, lambda i: (i, 0))

    def resident(shape):
        # Weight/bias: constant block index -> stays resident in VMEM.
        return pl.BlockSpec(shape, lambda i: (0, 0))

    out_full = pl.pallas_call(
        _mlp_kernel,
        out_shape=jax.ShapeDtypeStruct((b_pad, OUT_PAD), jnp.bfloat16),
        grid=(num_tiles,),
        in_specs=[
            tiled((tb, IN_DIM)),
            resident((IN_DIM, H1_PAD)), resident((1, H1_PAD)),
            resident((H1_PAD, H2_PAD)), resident((1, H2_PAD)),
            resident((H2_PAD, OUT_PAD)), resident((1, OUT_PAD)),
        ],
        out_specs=tiled((tb, OUT_PAD)),
        compiler_params=pltpu.CompilerParams(
            dimension_semantics=("parallel",)),
    )(x_p, w1_p, b1_p, w2_p, b2_p, w3_p, b3_p)

    return out_full[:B, :OUT_DIM].astype(jnp.float32)


def _init_linear(key, fan_in, fan_out):
    """Deterministic init mimicking PyTorch Linear: U(-1/sqrt(fan_in), +1/sqrt(fan_in)).
    Returns W of shape (fan_in, fan_out) (already transposed) and b of shape (1, fan_out)."""
    kw, kb = jax.random.split(key)
    bound = 1.0 / jnp.sqrt(jnp.float32(fan_in))
    w = jax.random.uniform(kw, (fan_in, fan_out), jnp.float32, -bound, bound)
    b = jax.random.uniform(kb, (1, fan_out), jnp.float32, -bound, bound)
    return w, b


def _reference_forward(x, w1, b1, w2, b2, w3, b3):
    h1 = jnp.maximum(x @ w1 + b1, 0.0)
    h2 = jnp.maximum(h1 @ w2 + b2, 0.0)
    return h2 @ w3 + b3


if __name__ == "__main__":
    key = jax.random.PRNGKey(0)
    kx, k1, k2, k3 = jax.random.split(key, 4)

    B = 8  # small demo batch (adaptively padded to 16 rows / 1 tile inside wrapper)
    x = jax.random.normal(kx, (B, IN_DIM), jnp.float32)

    w1, b1 = _init_linear(k1, IN_DIM, H1)
    w2, b2 = _init_linear(k2, H1, H2)
    w3, b3 = _init_linear(k3, H2, OUT_DIM)

    # Weight padding / bf16 casting happens once, outside the per-call path.
    params = prepare_params(w1, b1, w2, b2, w3, b3)
    params = jax.block_until_ready(params)

    out = net2_forward(x, params)
    out = jax.block_until_ready(out)

    ref = _reference_forward(x, w1, b1, w2, b2, w3, b3)
    assert out.shape == (B, OUT_DIM)
    # bf16 matmul inputs + bf16 logits writeback with f32 accumulation
    # -> loosened tolerance vs f32 reference.
    assert jnp.allclose(out, ref, atol=2e-2, rtol=2e-2), "mismatch vs JAX reference"

    print("KERNEL_OK")
</pallas_src>

<mosaic_0001>
module attributes {stable_mosaic.version = 11 : i64} {
  func.func @_mlp_kernel(%arg0: i32, %arg1: memref<16x784xf32, #tpu.memory_space<vmem>>, %arg2: memref<784x256xbf16, #tpu.memory_space<vmem>>, %arg3: memref<1x256xf32, #tpu.memory_space<vmem>>, %arg4: memref<256x512xbf16, #tpu.memory_space<vmem>>, %arg5: memref<1x512xf32, #tpu.memory_space<vmem>>, %arg6: memref<512x128xbf16, #tpu.memory_space<vmem>>, %arg7: memref<1x128xf32, #tpu.memory_space<vmem>>, %arg8: memref<16x128xbf16, #tpu.memory_space<vmem>>) attributes {dimension_semantics = [#tpu.dimension_semantics<parallel>], iteration_bounds = array<i64: 1>, scalar_prefetch = 0 : i64, scratch_operands = 0 : i64, tpu.core_type = #tpu.core_type<tc>, window_params = [{transform_indices = @transform_0, window_bounds = array<i64: 16, 784>}, {pipeline_mode = #tpu.pipeline_mode<synchronous>, transform_indices = @transform_1, window_bounds = array<i64: 784, 256>}, {pipeline_mode = #tpu.pipeline_mode<synchronous>, transform_indices = @transform_2, window_bounds = array<i64: 1, 256>}, {pipeline_mode = #tpu.pipeline_mode<synchronous>, transform_indices = @transform_3, window_bounds = array<i64: 256, 512>}, {pipeline_mode = #tpu.pipeline_mode<synchronous>, transform_indices = @transform_4, window_bounds = array<i64: 1, 512>}, {pipeline_mode = #tpu.pipeline_mode<synchronous>, transform_indices = @transform_5, window_bounds = array<i64: 512, 128>}, {pipeline_mode = #tpu.pipeline_mode<synchronous>, transform_indices = @transform_6, window_bounds = array<i64: 1, 128>}, {transform_indices = @transform_7, window_bounds = array<i64: 16, 128>}]} {
    %c0 = arith.constant 0 : index
    %c0_0 = arith.constant 0 : index
    %0 = vector.load %arg1[%c0, %c0_0] : memref<16x784xf32, #tpu.memory_space<vmem>>, vector<16x784xf32>
    %1 = arith.truncf %0 : vector<16x784xf32> to vector<16x784xbf16>
    %c0_1 = arith.constant 0 : index
    %c0_2 = arith.constant 0 : index
    %2 = vector.load %arg2[%c0_1, %c0_2] : memref<784x256xbf16, #tpu.memory_space<vmem>>, vector<784x256xbf16>
    %cst = arith.constant dense<0.000000e+00> : vector<16x256xf32>
    %3 = tpu.matmul %1, %2, %cst {dimension_numbers = #tpu.dot_dimension_numbers<[1], [0], [0], [1], [0, 0, 1, 1], [], []>} : vector<16x784xbf16>, vector<784x256xbf16>, vector<16x256xf32> -> vector<16x256xf32>
    %c0_3 = arith.constant 0 : index
    %c0_4 = arith.constant 0 : index
    %4 = vector.load %arg3[%c0_3, %c0_4] : memref<1x256xf32, #tpu.memory_space<vmem>>, vector<1x256xf32>
    %5 = vector.broadcast %4 : vector<1x256xf32> to vector<16x256xf32>
    %6 = arith.addf %3, %5 : vector<16x256xf32>
    %cst_5 = arith.constant 0.000000e+00 : f32
    %7 = vector.broadcast %cst_5 : f32 to vector<16x256xf32>
    %8 = arith.maximumf %6, %7 : vector<16x256xf32>
    %9 = arith.truncf %8 : vector<16x256xf32> to vector<16x256xbf16>
    %c0_6 = arith.constant 0 : index
    %c0_7 = arith.constant 0 : index
    %10 = vector.load %arg4[%c0_6, %c0_7] : memref<256x512xbf16, #tpu.memory_space<vmem>>, vector<256x512xbf16>
    %cst_8 = arith.constant dense<0.000000e+00> : vector<16x512xf32>
    %11 = tpu.matmul %9, %10, %cst_8 {dimension_numbers = #tpu.dot_dimension_numbers<[1], [0], [0], [1], [0, 0, 1, 1], [], []>} : vector<16x256xbf16>, vector<256x512xbf16>, vector<16x512xf32> -> vector<16x512xf32>
    %c0_9 = arith.constant 0 : index
    %c0_10 = arith.constant 0 : index
    %12 = vector.load %arg5[%c0_9, %c0_10] : memref<1x512xf32, #tpu.memory_space<vmem>>, vector<1x512xf32>
    %13 = vector.broadcast %12 : vector<1x512xf32> to vector<16x512xf32>
    %14 = arith.addf %11, %13 : vector<16x512xf32>
    %cst_11 = arith.constant 0.000000e+00 : f32
    %15 = vector.broadcast %cst_11 : f32 to vector<16x512xf32>
    %16 = arith.maximumf %14, %15 : vector<16x512xf32>
    %17 = arith.truncf %16 : vector<16x512xf32> to vector<16x512xbf16>
    %c0_12 = arith.constant 0 : index
    %c0_13 = arith.constant 0 : index
    %18 = vector.load %arg6[%c0_12, %c0_13] : memref<512x128xbf16, #tpu.memory_space<vmem>>, vector<512x128xbf16>
    %cst_14 = arith.constant dense<0.000000e+00> : vector<16x128xf32>
    %19 = tpu.matmul %17, %18, %cst_14 {dimension_numbers = #tpu.dot_dimension_numbers<[1], [0], [0], [1], [0, 0, 1, 1], [], []>} : vector<16x512xbf16>, vector<512x128xbf16>, vector<16x128xf32> -> vector<16x128xf32>
    %c0_15 = arith.constant 0 : index
    %c0_16 = arith.constant 0 : index
    %20 = vector.load %arg7[%c0_15, %c0_16] : memref<1x128xf32, #tpu.memory_space<vmem>>, vector<1x128xf32>
    %21 = vector.broadcast %20 : vector<1x128xf32> to vector<16x128xf32>
    %22 = arith.addf %19, %21 : vector<16x128xf32>
    %23 = arith.truncf %22 : vector<16x128xf32> to vector<16x128xbf16>
    %c0_17 = arith.constant 0 : index
    %c0_18 = arith.constant 0 : index
    %24 = vector.load %arg8[%c0_17, %c0_18] : memref<16x128xbf16, #tpu.memory_space<vmem>>, vector<16x128xbf16>
    tpu.vector_store %arg8[%c0_17, %c0_18], %23 {strides = array<i32>} : memref<16x128xbf16, #tpu.memory_space<vmem>>, vector<16x128xbf16>,
    return
  }
  func.func @transform_0(%arg0: i32) -> (i32, i32) {
    %c0_i32 = arith.constant 0 : i32
    %c0_i32_0 = arith.constant 0 : i32
    return %arg0, %c0_i32 : i32, i32
  }
  func.func @transform_1(%arg0: i32) -> (i32, i32) {
    %c0_i32 = arith.constant 0 : i32
    %c0_i32_0 = arith.constant 0 : i32
    %c0_i32_1 = arith.constant 0 : i32
    return %c0_i32, %c0_i32_0 : i32, i32
  }
  func.func @transform_2(%arg0: i32) -> (i32, i32) {
    %c0_i32 = arith.constant 0 : i32
    %c0_i32_0 = arith.constant 0 : i32
    %c0_i32_1 = arith.constant 0 : i32
    return %c0_i32, %c0_i32_0 : i32, i32
  }
  func.func @transform_3(%arg0: i32) -> (i32, i32) {
    %c0_i32 = arith.constant 0 : i32
    %c0_i32_0 = arith.constant 0 : i32
    %c0_i32_1 = arith.constant 0 : i32
    return %c0_i32, %c0_i32_0 : i32, i32
  }
  func.func @transform_4(%arg0: i32) -> (i32, i32) {
    %c0_i32 = arith.constant 0 : i32
    %c0_i32_0 = arith.constant 0 : i32
    %c0_i32_1 = arith.constant 0 : i32
    return %c0_i32, %c0_i32_0 : i32, i32
  }
  func.func @transform_5(%arg0: i32) -> (i32, i32) {
    %c0_i32 = arith.constant 0 : i32
    %c0_i32_0 = arith.constant 0 : i32
    %c0_i32_1 = arith.constant 0 : i32
    return %c0_i32, %c0_i32_0 : i32, i32
  }
  func.func @transform_6(%arg0: i32) -> (i32, i32) {
    %c0_i32 = arith.constant 0 : i32
    %c0_i32_0 = arith.constant 0 : i32
    %c0_i32_1 = arith.constant 0 : i32
    return %c0_i32, %c0_i32_0 : i32, i32
  }
  func.func @transform_7(%arg0: i32) -> (i32, i32) {
    %c0_i32 = arith.constant 0 : i32
    %c0_i32_0 = arith.constant 0 : i32
    return %arg0, %c0_i32 : i32, i32
  }
}

</mosaic_0001>

<bundles_post_ra>
// kernel: tpu_custom_call.1
= control target key start
LH: loop header
LB: loop body
LE: loop exit
PB: predicated region body
PF: predicated region fallthrough
CT: control target
= control target key end

     0   :  { %12 = vsyncpa [#allocation3], 0  ;;  %s2508_s0 = inlined_call_operand.hbm [shape: f32[16,784], index: 0, kind: input, shape index: {}]   ;;  %s2509_s1 = inlined_call_operand.hbm [shape: bf16[784,256], index: 1, kind: input, shape index: {}]   ;;  %s2510_s2 = inlined_call_operand.vmem [shape: f32[1,256], index: 2, kind: input, shape index: {}]   ;;  %s2511_s3 = inlined_call_operand.hbm [shape: bf16[256,512], index: 3, kind: input, shape index: {}]   ;;  %s2512_s4 = inlined_call_operand.vmem [shape: f32[1,512], index: 4, kind: input, shape index: {}]   ;;  %s2513_s5 = inlined_call_operand.hbm [shape: bf16[512,128], index: 5, kind: input, shape index: {}]   ;;  %s2514_s6 = inlined_call_operand.vmem [shape: f32[1,128], index: 6, kind: input, shape index: {}]   ;;  %s2515_s7 = inlined_call_operand.hbm [shape: bf16[16,128], index: 7, kind: output, shape index: {}]  }
   0x1   :  { %13 = vsyncpa [#allocation6], 0 }
   0x2   :  { %14 = vsyncpa [#allocation9], 0 }
   0x3   :  { %15 = vsyncpa [#allocation4], 0  ;;  %s2410_s24 = smov [#allocation5]  }
   0x4   :  { %s33_s25 = sshll.u32 %s2410_s24, 4  ;;  %s34_s25 = int_to_ptr.vmem [resolvable:$true] %s33_s25 }
   0x5   :  { %s2310_s26 = scalar_lea.vmem %s34_s25, 12544  ;;  %p2315_p1 = scmp.lt.s32.totalorder %s34_s25, %s34_s25 }
   0x6   :  { %p2311_p0 = scmp.ne.s32.totalorder %s34_s25, %s2310_s26  ;;  %p2316_p2 = scmp.lt.s32.totalorder %s2310_s26, %s2310_s26 }
   0x8   :  { %p2317_p3 = por %p2316_p2, %p2315_p1 }
   0xa   :  { %p2318_p4 = pnand %p2317_p3, %p2311_p0 }
   0xc   :  { %2321 = shalt.err (!%p2318_p4)
}
   0xd   :  { %s2411_s27 = smov 128   ;;  %s2412_s28 = smov 8  }
   0xe   :  { %39 = dma.hbm_to_vmem [thread:$0]  %s2509_s1, 12544, %s34_s25, [#allocation6], %s2411_s27, %s2411_s27, %s2412_s28  }
   0xf   :  { %s2413_s8 = smov [#allocation2]  }
  0x10   :  { %s21_s9 = sshll.u32 %s2413_s8, 4  ;;  %s22_s9 = int_to_ptr.vmem [resolvable:$true] %s21_s9 }
  0x11   :  { %s2330_s10 = scalar_lea.vmem %s22_s9, 1792  ;;  %p2335_p6 = scmp.lt.s32.totalorder %s22_s9, %s22_s9 }
  0x12   :  { %p2331_p5 = scmp.ne.s32.totalorder %s22_s9, %s2330_s10  ;;  %p2336_p7 = scmp.lt.s32.totalorder %s2330_s10, %s2330_s10 }
  0x14   :  { %p2337_p8 = por %p2336_p7, %p2335_p6 }
  0x16   :  { %p2338_p9 = pnand %p2337_p8, %p2331_p5 }
  0x18   :  { %2341 = shalt.err (!%p2338_p9)
}
  0x19   :  { %s2414_s11 = smov 896   ;;  %s2415_s12 = smov 56  }
  0x1a   :  { %27 = dma.hbm_to_vmem [thread:$0]  %s2508_s0, 1792, %s22_s9, [#allocation3], %s2414_s11, %s2414_s11, %s2415_s12  }
  0x1b   :  { %s2416_s15 = smov [#allocation7]  }
  0x1c   :  { %s47_s16 = sshll.u32 %s2416_s15, 4  ;;  %s48_s16 = int_to_ptr.vmem [resolvable:$true] %s47_s16 }
  0x1d   :  { %s2350_s1 = scalar_lea.vmem %s48_s16, 8192  ;;  %p2355_p11 = scmp.lt.s32.totalorder %s48_s16, %s48_s16 }
  0x1e   :  { %p2351_p10 = scmp.ne.s32.totalorder %s48_s16, %s2350_s1  ;;  %p2356_p12 = scmp.lt.s32.totalorder %s2350_s1, %s2350_s1 }
  0x20   :  { %p2357_p13 = por %p2356_p12, %p2355_p11 }
  0x22   :  { %p2358_p0 = pnand %p2357_p13, %p2351_p10 }
  0x24   :  { %2361 = shalt.err (!%p2358_p0)
}
  0x25   :  { %s2417_s17 = smov 256   ;;  %s2418_s18 = smov 16  }
  0x26   :  { %53 = dma.hbm_to_vmem [thread:$0]  %s2511_s3, 8192, %s48_s16, [#allocation6], %s2417_s17, %s2417_s17, %s2418_s18  }
  0x27   :  { %s2419_s21 = smov [#allocation8]  }
  0x28   :  { %s61_s22 = sshll.u32 %s2419_s21, 4  ;;  %s62_s22 = int_to_ptr.vmem [resolvable:$true] %s61_s22 }
  0x29   :  { %s2370_s0 = scalar_lea.vmem %s62_s22, 4096  ;;  %p2375_p2 = scmp.lt.s32.totalorder %s62_s22, %s62_s22 }
  0x2a   :  { %p2371_p1 = scmp.ne.s32.totalorder %s62_s22, %s2370_s0  ;;  %p2376_p3 = scmp.lt.s32.totalorder %s2370_s0, %s2370_s0 }
  0x2c   :  { %p2377_p4 = por %p2376_p3, %p2375_p2 }
  0x2e   :  { %p2378_p5 = pnand %p2377_p4, %p2371_p1 }
  0x30   :  { %2381 = shalt.err (!%p2378_p5)
}
  0x31   :  { %s2420_s23 = smov 64   ;;  %s2421_s24 = smov 4  }
  0x32   :  { %67 = dma.hbm_to_vmem [thread:$0]  %s2513_s5, 4096, %s62_s22, [#allocation9], %s2420_s23, %s2420_s23, %s2421_s24  }
  0x33   :  { %2402 = dma.done.wait [#allocation3], 1792  }
  0x34   :  { %2403 = vsyncadd [#allocation3], 4294965504 }
  0x35   :  { %2404 = dma.done.wait [#allocation6], 20736  }
  0x36   :  { %2405 = vsyncadd [#allocation6], 4294946560 }
  0x37   :  { %2406 = dma.done.wait [#allocation9], 4096  }
  0x38   :  { %2407 = vsyncadd [#allocation9], 4294963200  ;;  %v2027_v0 = vld [vmem:[#allocation5 + $0x74] ss:$8 sps:$4 sm:$0xff]   ;;  %v2029_v1 = vld [vmem:[#allocation5 + $0x70] ss:$8 sps:$4 sm:$0xff]  }
  0x39   :  { %708 = vmatprep.subr.bf16.mxu0 %v2027_v0  ;;  %v2030_v2 = vld [vmem:[#allocation5 + $0x174] ss:$8 sps:$4 sm:$0xff]   ;;  %v2032_v3 = vld [vmem:[#allocation5 + $0x170] ss:$8 sps:$4 sm:$0xff]   ;;  %v2033_v4 = vld [vmem:[#allocation5 + $0x64] ss:$8 sps:$4 sm:$0xff]  }
  0x3a   :  { %709 = vmatpush1.bf16.msra.mxu0 %v2029_v1  ;;  %v2035_v5 = vld [vmem:[#allocation5 + $0x60] ss:$8 sps:$4 sm:$0xff]   ;;  %751 = vmatprep.subr.bf16.mxu1 %v2030_v2  ;;  %v2036_v6 = vld [vmem:[#allocation5 + $0x164] ss:$8 sps:$4 sm:$0xff]   ;;  %v2039_v8 = vld [vmem:[#allocation5 + $0x54] ss:$8 sps:$4 sm:$0xff]  }
  0x3b   :  { %752 = vmatpush1.bf16.msra.mxu1 %v2032_v3  ;;  %710 = vmatprep.subr.bf16.mxu0 %v2033_v4  ;;  %v2038_v7 = vld [vmem:[#allocation5 + $0x160] ss:$8 sps:$4 sm:$0xff]   ;;  %v2041_v9 = vld [vmem:[#allocation5 + $0x50] ss:$8 sps:$4 sm:$0xff]   ;;  %v2042_v10 = vld [vmem:[#allocation5 + $0x154] ss:$8 sps:$4 sm:$0xff]  }
  0x3c   :  { %753 = vmatprep.subr.bf16.mxu1 %v2036_v6  ;;  %v2045_v11 = vld [vmem:[#allocation5 + $0x44] ss:$8 sps:$4 sm:$0xff]   ;;  %v2044_v12 = vld [vmem:[#allocation5 + $0x150] ss:$8 sps:$4 sm:$0xff]   ;;  %v2047_v14 = vld [vmem:[#allocation5 + $0x40] ss:$8 sps:$4 sm:$0xff]  }
  0x3d   :  { %v2048_v13 = vld [vmem:[#allocation5 + $0x144] ss:$8 sps:$4 sm:$0xff]   ;;  %v2051_v15 = vld [vmem:[#allocation5 + $0x34] ss:$8 sps:$4 sm:$0xff]   ;;  %v2050_v16 = vld [vmem:[#allocation5 + $0x140] ss:$8 sps:$4 sm:$0xff]  }
  0x3e   :  { %711 = vmatpush1.bf16.msra.mxu0 %v2035_v5  ;;  %v2054_v17 = vld [vmem:[#allocation5 + $0x134] ss:$8 sps:$4 sm:$0xff]   ;;  %v2053_v18 = vld [vmem:[#allocation5 + $0x30] ss:$8 sps:$4 sm:$0xff]   ;;  %v2057_v19 = vld [vmem:[#allocation5 + $0x24] ss:$8 sps:$4 sm:$0xff]  }
  0x3f   :  { %712 = vmatprep.subr.bf16.mxu0 %v2039_v8  ;;  %754 = vmatpush1.bf16.msra.mxu1 %v2038_v7  ;;  %v2056_v20 = vld [vmem:[#allocation5 + $0x130] ss:$8 sps:$4 sm:$0xff]   ;;  %v2060_v21 = vld [vmem:[#allocation5 + $0x124] ss:$8 sps:$4 sm:$0xff]   ;;  %v2059_v22 = vld [vmem:[#allocation5 + $0x20] ss:$8 sps:$4 sm:$0xff]  }
  0x40   :  { %755 = vmatprep.subr.bf16.mxu1 %v2042_v10  ;;  %v2063_v23 = vld [vmem:[#allocation5 + $0x14] ss:$8 sps:$4 sm:$0xff]   ;;  %v2062_v24 = vld [vmem:[#allocation5 + $0x120] ss:$8 sps:$4 sm:$0xff]   ;;  %v2065_v26 = vld [vmem:[#allocation5 + $0x10] ss:$8 sps:$4 sm:$0xff]  }
  0x41   :  { %v2066_v25 = vld [vmem:[#allocation5 + $0x114] ss:$8 sps:$4 sm:$0xff]   ;;  %v2069_v27 = vld [vmem:[#allocation5 + $0x4] ss:$8 sps:$4 sm:$0xff]   ;;  %v2068_v28 = vld [vmem:[#allocation5 + $0x110] ss:$8 sps:$4 sm:$0xff]  }
  0x42   :  { %713 = vmatpush1.bf16.msra.mxu0 %v2041_v9  ;;  %v2072_v29 = vld [vmem:[#allocation5 + $0x104] ss:$8 sps:$4 sm:$0xff]   ;;  %v2071_v30 = vld [vmem:[#allocation5] ss:$8 sps:$4 sm:$0xff]   ;;  %v2075_v31 = vld [vmem:[#allocation5 + $0xf4] ss:$8 sps:$4 sm:$0xff]  }
  0x43   :  { %714 = vmatprep.subr.bf16.mxu0 %v2045_v11  ;;  %756 = vmatpush1.bf16.msra.mxu1 %v2044_v12  ;;  %v2074_v32 = vld [vmem:[#allocation5 + $0x100] ss:$8 sps:$4 sm:$0xff]   ;;  %v2078_v33 = vld [vmem:[#allocation5 + $0x1f4] ss:$8 sps:$4 sm:$0xff]   ;;  %v2077_v34 = vld [vmem:[#allocation5 + $0xf0] ss:$8 sps:$4 sm:$0xff]  }
  0x44   :  { %757 = vmatprep.subr.bf16.mxu1 %v2048_v13  ;;  %v2081_v35 = vld [vmem:[#allocation5 + $0xe4] ss:$8 sps:$4 sm:$0xff]   ;;  %v2080_v36 = vld [vmem:[#allocation5 + $0x1f0] ss:$8 sps:$4 sm:$0xff]   ;;  %v2083_v38 = vld [vmem:[#allocation5 + $0xe0] ss:$8 sps:$4 sm:$0xff]  }
  0x45   :  { %v2084_v37 = vld [vmem:[#allocation5 + $0x1e4] ss:$8 sps:$4 sm:$0xff]   ;;  %v2087_v39 = vld [vmem:[#allocation5 + $0xd4] ss:$8 sps:$4 sm:$0xff]   ;;  %v2086_v40 = vld [vmem:[#allocation5 + $0x1e0] ss:$8 sps:$4 sm:$0xff]  }
  0x46   :  { %715 = vmatpush1.bf16.msra.mxu0 %v2047_v14  ;;  %v2090_v41 = vld [vmem:[#allocation5 + $0x1d4] ss:$8 sps:$4 sm:$0xff]   ;;  %v2089_v42 = vld [vmem:[#allocation5 + $0xd0] ss:$8 sps:$4 sm:$0xff]   ;;  %v2093_v43 = vld [vmem:[#allocation5 + $0xc4] ss:$8 sps:$4 sm:$0xff]  }
  0x47   :  { %716 = vmatprep.subr.bf16.mxu0 %v2051_v15  ;;  %758 = vmatpush1.bf16.msra.mxu1 %v2050_v16  ;;  %v2092_v44 = vld [vmem:[#allocation5 + $0x1d0] ss:$8 sps:$4 sm:$0xff]   ;;  %v2096_v45 = vld [vmem:[#allocation5 + $0x1c4] ss:$8 sps:$4 sm:$0xff]   ;;  %v2095_v48 = vld [vmem:[#allocation5 + $0xc0] ss:$8 sps:$4 sm:$0xff]  }
  0x48   :  { %759 = vmatprep.subr.bf16.mxu1 %v2054_v17  ;;  %v84_v46 = vld [vmem:[#allocation2 + $0x8] sm:$0xff]  ;;  %v91_v47 = vld [vmem:[#allocation2 + $0x40] sm:$0xff]  ;;  %v2098_v51 = vld [vmem:[#allocation5 + $0x1c0] ss:$8 sps:$4 sm:$0xff]   ;;  %vm704_vm0 = vcmask 130048   ;;  %s2423_s29 = smov [#allocation10]  }
  0x49   :  { %v98_v49 = vpack.c.bf16 %v91_v47, %v84_v46  ;;  %v2099_v50 = vld [vmem:[#allocation5 + $0xb4] ss:$8 sps:$4 sm:$0xff]   ;;  %v86_v52 = vld [vmem:[#allocation2 + $0x18] sm:$0xff]  ;;  %v93_v53 = vld [vmem:[#allocation2 + $0x50] sm:$0xff]  ;;  %s1750_s30 = sshll.u32 %s2423_s29, 4  ;;  %s1751_s30 = int_to_ptr.vmem [resolvable:$true] %s1750_s30 }
  0x4a   :  { %717 = vmatpush1.bf16.msra.mxu0 %v2053_v18  ;;  %v2102_v54 = vld [vmem:[#allocation5 + $0x1b4] ss:$8 sps:$4 sm:$0xff]   ;;  %v100_v55 = vpack.c.bf16 %v93_v53, %v86_v52  ;;  %v2101_v56 = vld [vmem:[#allocation5 + $0xb0] ss:$8 sps:$4 sm:$0xff]   ;;  %v2105_v57 = vld [vmem:[#allocation5 + $0xa4] ss:$8 sps:$4 sm:$0xff]   ;;  %p2387_p7 = scmp.lt.s32.totalorder %s1751_s30, %s1751_s30 }
  0x4b   :  { %718 = vmatprep.subr.bf16.mxu0 %v2057_v19  ;;  %760 = vmatpush1.bf16.msra.mxu1 %v2056_v20  ;;  %v2104_v58 = vld [vmem:[#allocation5 + $0x1b0] ss:$8 sps:$4 sm:$0xff]   ;;  %v2108_v59 = vld [vmem:[#allocation5 + $0x1a4] ss:$8 sps:$4 sm:$0xff]   ;;  %v2107_v60 = vld [vmem:[#allocation5 + $0xa0] ss:$8 sps:$4 sm:$0xff]  }
  0x4c   :  { %761 = vmatprep.subr.bf16.mxu1 %v2060_v21  ;;  %740 = vmatprep.mubr.bf16.mxu0 %v98_v49  ;;  %v2111_v61 = vld [vmem:[#allocation5 + $0x94] ss:$8 sps:$4 sm:$0xff]   ;;  %v2110_v62 = vld [vmem:[#allocation5 + $0x1a0] ss:$8 sps:$4 sm:$0xff]   ;;  %v2113_v0 = vld [vmem:[#allocation5 + $0x90] ss:$8 sps:$4 sm:$0xff]  }
  0x4d   :  { %783 = vmatprep.mubr.bf16.mxu1 %v100_v55  ;;  %v2114_v63 = vld [vmem:[#allocation5 + $0x194] ss:$8 sps:$4 sm:$0xff]   ;;  %v2116_v1 = vld [vmem:[#allocation5 + $0x190] ss:$8 sps:$4 sm:$0xff]   ;;  %v2117_v2 = vld [vmem:[#allocation5 + $0x84] ss:$8 sps:$4 sm:$0xff]  }
  0x4e   :  { %719 = vmatpush1.bf16.msra.mxu0 %v2059_v22  ;;  %v2119_v3 = vld [vmem:[#allocation5 + $0x80] ss:$8 sps:$4 sm:$0xff]   ;;  %v2120_v4 = vld [vmem:[#allocation5 + $0x184] ss:$8 sps:$4 sm:$0xff]   ;;  %v83_v5 = vld [vmem:[#allocation2] sm:$0xff]  ;;  %v2422_v21 = vmov 0  }
  0x4f   :  { %720 = vmatprep.subr.bf16.mxu0 %v2063_v23  ;;  %762 = vmatpush1.bf16.msra.mxu1 %v2062_v24  ;;  %v2122_v6 = vld [vmem:[#allocation5 + $0x180] ss:$8 sps:$4 sm:$0xff]   ;;  %v2125_v8 = vld [vmem:[#allocation5 + $0x274] ss:$8 sps:$4 sm:$0xff]   ;;  %v2123_v12 = vld [vmem:[#allocation5 + $0x270] ss:$8 sps:$4 sm:$0xff]  }
  0x50   :  { %763 = vmatprep.subr.bf16.mxu1 %v2066_v25  ;;  %v90_v7 = vld [vmem:[#allocation2 + $0x38] sm:$0xff]  ;;  %v85_v9 = vld [vmem:[#allocation2 + $0x10] sm:$0xff]  ;;  %v92_v10 = vld [vmem:[#allocation2 + $0x48] sm:$0xff]  ;;  %s2382_s8 = scalar_lea.vmem %s1751_s30, 128 }
  0x51   :  { %v97_v11 = vpack.c.bf16 %v90_v7, %v83_v5  ;;  %v99_v13 = vpack.c.bf16 %v92_v10, %v85_v9  ;;  %v2128_v14 = vld [vmem:[#allocation5 + $0x264] ss:$8 sps:$4 sm:$0xff]   ;;  %v2168_v15 = vld [vmem:[#allocation5 + $0x300] ss:$8 sps:$4 sm:$0xff]   ;;  %v2131_v18 = vld [vmem:[#allocation5 + $0x254] ss:$8 sps:$4 sm:$0xff]   ;;  %p2383_p6 = scmp.ne.s32.totalorder %s1751_s30, %s2382_s8  ;;  %p2388_p8 = scmp.lt.s32.totalorder %s2382_s8, %s2382_s8 }
  0x52   :  { %721 = vmatpush1.bf16.msra.mxu0 %v2065_v26  ;;  %v2170_v16 = vld [vmem:[#allocation5 + $0x304] ss:$8 sps:$4 sm:$0xff]   ;;  %v2126_v17 = vld [vmem:[#allocation5 + $0x260] ss:$8 sps:$4 sm:$0xff]   ;;  %v88_v19 = vld [vmem:[#allocation2 + $0x28] sm:$0xff] }
  0x53   :  { %722 = vmatprep.subr.bf16.mxu0 %v2069_v27  ;;  %764 = vmatpush1.bf16.msra.mxu1 %v2068_v28  ;;  %v2129_v20 = vld [vmem:[#allocation5 + $0x250] ss:$8 sps:$4 sm:$0xff]   ;;  %v89_v22 = vld [vmem:[#allocation2 + $0x30] sm:$0xff]  ;;  %v2167_v49 = vld [vmem:[#allocation5 + $0x294] ss:$8 sps:$4 sm:$0xff]   ;;  %p2389_p9 = por %p2388_p8, %p2387_p7 }
  0x54   :  { %765 = vmatprep.subr.bf16.mxu1 %v2072_v29  ;;  %v96_v23 = vld [vmem:[#allocation2 + $0x68] sm:$0xff]  ;;  %v95_v24 = vld [vmem:[#allocation2 + $0x60] sm:$0xff]  ;;  %v2134_v25 = vld [vmem:[#allocation5 + $0x244] ss:$8 sps:$4 sm:$0xff]  }
  0x55   :  { %v102_v26 = vpack.c.bf16 %v95_v24, %v88_v19  ;;  %v103_v27 = vpack.c.bf16 %v96_v23, %v89_v22  ;;  %v2132_v28 = vld [vmem:[#allocation5 + $0x240] ss:$8 sps:$4 sm:$0xff]   ;;  %v2137_v29 = vld [vmem:[#allocation5 + $0x234] ss:$8 sps:$4 sm:$0xff]   ;;  %v2159_v46 = vld [vmem:[#allocation5 + $0x2b0] ss:$8 sps:$4 sm:$0xff]   ;;  %p2390_p10 = pnand %p2389_p9, %p2383_p6 }
  0x56   :  { %723 = vmatpush1.bf16.msra.mxu0 %v2071_v30  ;;  %v2135_v30 = vld [vmem:[#allocation5 + $0x230] ss:$8 sps:$4 sm:$0xff]   ;;  %v2164_v47 = vld [vmem:[#allocation5 + $0x2a4] ss:$8 sps:$4 sm:$0xff]   ;;  %v2171_v52 = vld [vmem:[#allocation5 + $0x280] ss:$8 sps:$4 sm:$0xff]  }
  0x57   :  { %724 = vmatprep.subr.bf16.mxu0 %v2075_v31  ;;  %766 = vmatpush1.bf16.msra.mxu1 %v2074_v32  ;;  %v2140_v31 = vld [vmem:[#allocation5 + $0x224] ss:$8 sps:$4 sm:$0xff]   ;;  %v2138_v32 = vld [vmem:[#allocation5 + $0x220] ss:$8 sps:$4 sm:$0xff]   ;;  %v87_v53 = vld [vmem:[#allocation2 + $0x20] sm:$0xff] }
  0x58   :  { %767 = vmatprep.subr.bf16.mxu1 %v2078_v33  ;;  %v2143_v33 = vld [vmem:[#allocation5 + $0x214] ss:$8 sps:$4 sm:$0xff]   ;;  %v2195_v7 = vld [vmem:[#allocation7 + $0x88] ss:$16 sps:$4 sm:$0xff]   ;;  %v2198_v10 = vld [vmem:[#allocation7 + $0x60] ss:$16 sps:$4 sm:$0xff]  }
  0x59   :  { %v2197_v5 = vld [vmem:[#allocation7 + $0x8c] ss:$16 sps:$4 sm:$0xff]   ;;  %v2213_v19 = vld [vmem:[#allocation7 + $0x28] ss:$16 sps:$4 sm:$0xff]   ;;  %v2216_v22 = vld [vmem:[#allocation7] ss:$16 sps:$4 sm:$0xff]  }
  0x5a   :  { %725 = vmatpush2.bf16.msra.mxu0 %v2077_v34  ;;  %v2141_v34 = vld [vmem:[#allocation5 + $0x210] ss:$8 sps:$4 sm:$0xff]   ;;  %v2203_v9 = vld [vmem:[#allocation7 + $0x6c] ss:$16 sps:$4 sm:$0xff]   ;;  %v2224_v24 = vld [vmem:[#allocation7 + $0x1e4] ss:$16 sps:$4 sm:$0xff]  }
  0x5b   :  { %726 = vmatprep.subr.bf16.mxu0 %v2081_v35  ;;  %768 = vmatpush2.bf16.msra.mxu1 %v2080_v36  ;;  %v2146_v35 = vld [vmem:[#allocation5 + $0x204] ss:$8 sps:$4 sm:$0xff]   ;;  %v2144_v36 = vld [vmem:[#allocation5 + $0x200] ss:$8 sps:$4 sm:$0xff]  }
  0x5c   :  { %769 = vmatprep.subr.bf16.mxu1 %v2084_v37  ;;  %v2149_v37 = vld [vmem:[#allocation5 + $0x2f4] ss:$8 sps:$4 sm:$0xff]   ;;  %v2219_v23 = vld [vmem:[#allocation7 + $0x8] ss:$16 sps:$4 sm:$0xff]  }
  0x5e   :  { %727 = vmatpush2.bf16.msra.mxu0 %v2083_v38  ;;  %v2147_v38 = vld [vmem:[#allocation5 + $0x2f0] ss:$8 sps:$4 sm:$0xff]  }
  0x5f   :  { %728 = vmatprep.subr.bf16.mxu0 %v2087_v39  ;;  %770 = vmatpush2.bf16.msra.mxu1 %v2086_v40  ;;  %v2152_v39 = vld [vmem:[#allocation5 + $0x2e4] ss:$8 sps:$4 sm:$0xff]   ;;  %v2150_v40 = vld [vmem:[#allocation5 + $0x2e0] ss:$8 sps:$4 sm:$0xff]  }
  0x60   :  { %771 = vmatprep.subr.bf16.mxu1 %v2090_v41  ;;  %v2155_v41 = vld [vmem:[#allocation5 + $0x2d4] ss:$8 sps:$4 sm:$0xff]  }
  0x62   :  { %729 = vmatpush2.bf16.msra.mxu0 %v2089_v42  ;;  %v2153_v42 = vld [vmem:[#allocation5 + $0x2d0] ss:$8 sps:$4 sm:$0xff]  }
  0x63   :  { %730 = vmatprep.subr.bf16.mxu0 %v2093_v43  ;;  %772 = vmatpush2.bf16.msra.mxu1 %v2092_v44  ;;  %v2158_v43 = vld [vmem:[#allocation5 + $0x2c4] ss:$8 sps:$4 sm:$0xff]   ;;  %v2156_v44 = vld [vmem:[#allocation5 + $0x2c0] ss:$8 sps:$4 sm:$0xff]  }
  0x64   :  { %773 = vmatprep.subr.bf16.mxu1 %v2096_v45  ;;  %v2161_v45 = vld [vmem:[#allocation5 + $0x2b4] ss:$8 sps:$4 sm:$0xff]  }
  0x66   :  { %731 = vmatpush2.bf16.msra.mxu0 %v2095_v48  ;;  %v2162_v48 = vld [vmem:[#allocation5 + $0x2a0] ss:$8 sps:$4 sm:$0xff]  }
  0x67   :  { %732 = vmatprep.subr.bf16.mxu0 %v2099_v50  ;;  %774 = vmatpush2.bf16.msra.mxu1 %v2098_v51  ;;  %v2165_v50 = vld [vmem:[#allocation5 + $0x290] ss:$8 sps:$4 sm:$0xff]   ;;  %v2173_v51 = vld [vmem:[#allocation5 + $0x284] ss:$8 sps:$4 sm:$0xff]  }
  0x68   :  { %775 = vmatprep.subr.bf16.mxu1 %v2102_v54  ;;  %v94_v54 = vld [vmem:[#allocation2 + $0x58] sm:$0xff] }
  0x69   :  { %v101_v55 = vpack.c.bf16 %v94_v54, %v87_v53  ;;  %v2269_v53 = vld [vmem:[#allocation7 + $0x10c] ss:$16 sps:$4 sm:$0xff]   ;;  %v2264_v54 = vld [vmem:[#allocation7 + $0x100] ss:$16 sps:$4 sm:$0xff]  }
  0x6a   :  { %733 = vmatpush2.bf16.msra.mxu0 %v2101_v56  ;;  %v2174_v56 = vld [vmem:[#allocation7 + $0xe0] ss:$16 sps:$4 sm:$0xff]  }
  0x6b   :  { %734 = vmatprep.subr.bf16.mxu0 %v2105_v57  ;;  %776 = vmatpush2.bf16.msra.mxu1 %v2104_v58  ;;  %v2176_v57 = vld [vmem:[#allocation7 + $0xe4] ss:$16 sps:$4 sm:$0xff]   ;;  %v2177_v58 = vld [vmem:[#allocation7 + $0xe8] ss:$16 sps:$4 sm:$0xff]  }
  0x6c   :  { %777 = vmatprep.subr.bf16.mxu1 %v2108_v59  ;;  %v2179_v59 = vld [vmem:[#allocation7 + $0xec] ss:$16 sps:$4 sm:$0xff]  }
  0x6e   :  { %735 = vmatpush2.bf16.msra.mxu0 %v2107_v60  ;;  %v2182_v60 = vld [vmem:[#allocation7 + $0xc4] ss:$16 sps:$4 sm:$0xff]  }
  0x6f   :  { %736 = vmatprep.subr.bf16.mxu0 %v2111_v61  ;;  %778 = vmatpush2.bf16.msra.mxu1 %v2110_v62  ;;  %v2185_v61 = vld [vmem:[#allocation7 + $0xcc] ss:$16 sps:$4 sm:$0xff]   ;;  %v2180_v62 = vld [vmem:[#allocation7 + $0xc0] ss:$16 sps:$4 sm:$0xff]  }
  0x70   :  { %779 = vmatprep.subr.bf16.mxu1 %v2114_v63  ;;  %v2183_v63 = vld [vmem:[#allocation7 + $0xc8] ss:$16 sps:$4 sm:$0xff]  }
  0x72   :  { %737 = vmatpush2.bf16.msra.mxu0 %v2113_v0  ;;  %v2188_v0 = vld [vmem:[#allocation7 + $0xa4] ss:$16 sps:$4 sm:$0xff]  }
  0x73   :  { %738 = vmatprep.subr.bf16.mxu0 %v2117_v2  ;;  %780 = vmatpush2.bf16.msra.mxu1 %v2116_v1  ;;  %v2191_v1 = vld [vmem:[#allocation7 + $0xac] ss:$16 sps:$4 sm:$0xff]   ;;  %v2186_v2 = vld [vmem:[#allocation7 + $0xa0] ss:$16 sps:$4 sm:$0xff]  }
  0x74   :  { %781 = vmatprep.subr.bf16.mxu1 %v2120_v4  ;;  %v2194_v4 = vld [vmem:[#allocation7 + $0x84] ss:$16 sps:$4 sm:$0xff]  }
  0x76   :  { %739 = vmatpush2.bf16.msra.mxu0 %v2119_v3  ;;  %v2189_v3 = vld [vmem:[#allocation7 + $0xa8] ss:$16 sps:$4 sm:$0xff]  }
  0x77   :  { %794 = vmatprep.subr.bf16.mxu0 %v2125_v8  ;;  %782 = vmatpush2.bf16.msra.mxu1 %v2122_v6  ;;  %v2192_v6 = vld [vmem:[#allocation7 + $0x80] ss:$16 sps:$4 sm:$0xff]   ;;  %v2200_v8 = vld [vmem:[#allocation7 + $0x64] ss:$16 sps:$4 sm:$0xff]  }
  0x78   :  { %851 = vmatprep.subr.bf16.mxu1 %v2170_v16  ;;  %v2212_v16 = vld [vmem:[#allocation7 + $0x24] ss:$16 sps:$4 sm:$0xff]  }
  0x79   :  { %741 = vmatmul.mubr.bf16.vlgmr.msra.gmra.mxu0 %v97_v11  ;;  %v2201_v11 = vld [vmem:[#allocation7 + $0x68] ss:$16 sps:$4 sm:$0xff]  }
  0x7a   :  { %795 = vmatpush1.bf16.msra.mxu0 %v2123_v12  ;;  %784 = vmatmul.mubr.bf16.vlgmr.msra.gmra.mxu1 %v99_v13  ;;  %v2206_v12 = vld [vmem:[#allocation7 + $0x44] ss:$16 sps:$4 sm:$0xff]   ;;  %v2209_v13 = vld [vmem:[#allocation7 + $0x4c] ss:$16 sps:$4 sm:$0xff]  }
  0x7b   :  { %796 = vmatprep.subr.bf16.mxu0 %v2128_v14  ;;  %869 = vmatprep.mubr.bf16.mxu1 %v2422_v21  ;;  %v2204_v14 = vld [vmem:[#allocation7 + $0x40] ss:$16 sps:$4 sm:$0xff]   ;;  %v2221_v21 = vld [vmem:[#allocation7 + $0xc] ss:$16 sps:$4 sm:$0xff]  }
  0x7c   :  { %852 = vmatpush1.bf16.msra.mxu1 %v2168_v15  ;;  %826 = vmatprep.mubr.bf16.mxu0 %v102_v26  ;;  %v2207_v15 = vld [vmem:[#allocation7 + $0x48] ss:$16 sps:$4 sm:$0xff]   ;;  %v2222_v26 = vld [vmem:[#allocation7 + $0x1e0] ss:$16 sps:$4 sm:$0xff]  }
  0x7d   :  { %1292 = vmatprep.subr.bf16.mxu1 %v2176_v57  ;;  %v204_v57 = vlaneseq }
  0x7e   :  { %797 = vmatpush1.bf16.msra.mxu0 %v2126_v17  ;;  %v2215_v17 = vld [vmem:[#allocation7 + $0x2c] ss:$16 sps:$4 sm:$0xff]  }
  0x7f   :  { %798 = vmatprep.subr.bf16.mxu0 %v2131_v18  ;;  %v2210_v18 = vld [vmem:[#allocation7 + $0x20] ss:$16 sps:$4 sm:$0xff]  }
  0x82   :  { %799 = vmatpush1.bf16.msra.mxu0 %v2129_v20  ;;  %1862 = vmatmul.mubr.msk.bf16.vlgmr.msra.gmra.mxu1 %vm704_vm0, %v103_v27  ;;  %v2218_v20 = vld [vmem:[#allocation7 + $0x4] ss:$16 sps:$4 sm:$0xff]   ;;  %v2225_v27 = vld [vmem:[#allocation7 + $0x1e8] ss:$16 sps:$4 sm:$0xff]  }
  0x83   :  { %800 = vmatprep.subr.bf16.mxu0 %v2134_v25  ;;  %1293 = vmatpush1.bf16.msra.mxu1 %v2174_v56  ;;  %v2227_v25 = vld [vmem:[#allocation7 + $0x1ec] ss:$16 sps:$4 sm:$0xff]  }
  0x84   :  { %1294 = vmatprep.subr.bf16.mxu1 %v2182_v60  ;;  %v2270_v56 = vld [vmem:[#allocation8 + $0x78] sm:$0xff]  }
  0x86   :  { %801 = vmatpush1.bf16.msra.mxu0 %v2132_v28  ;;  %v2230_v28 = vld [vmem:[#allocation7 + $0x1c4] ss:$16 sps:$4 sm:$0xff]  }
  0x87   :  { %802 = vmatprep.subr.bf16.mxu0 %v2137_v29  ;;  %1295 = vmatpush1.bf16.msra.mxu1 %v2180_v62  ;;  %v2233_v29 = vld [vmem:[#allocation7 + $0x1cc] ss:$16 sps:$4 sm:$0xff]  }
  0x88   :  { %1296 = vmatprep.subr.bf16.mxu1 %v2188_v0 }
  0x8a   :  { %803 = vmatpush1.bf16.msra.mxu0 %v2135_v30  ;;  %v2228_v30 = vld [vmem:[#allocation7 + $0x1c0] ss:$16 sps:$4 sm:$0xff]  }
  0x8b   :  { %804 = vmatprep.subr.bf16.mxu0 %v2140_v31  ;;  %1297 = vmatpush1.bf16.msra.mxu1 %v2186_v2  ;;  %v2231_v31 = vld [vmem:[#allocation7 + $0x1c8] ss:$16 sps:$4 sm:$0xff]  }
  0x8c   :  { %1298 = vmatprep.subr.bf16.mxu1 %v2194_v4 }
  0x8e   :  { %805 = vmatpush1.bf16.msra.mxu0 %v2138_v32  ;;  %v2236_v32 = vld [vmem:[#allocation7 + $0x1a4] ss:$16 sps:$4 sm:$0xff]  }
  0x8f   :  { %806 = vmatprep.subr.bf16.mxu0 %v2143_v33  ;;  %1299 = vmatpush1.bf16.msra.mxu1 %v2192_v6  ;;  %v2239_v33 = vld [vmem:[#allocation7 + $0x1ac] ss:$16 sps:$4 sm:$0xff]  }
  0x90   :  { %1300 = vmatprep.subr.bf16.mxu1 %v2200_v8 }
  0x92   :  { %807 = vmatpush1.bf16.msra.mxu0 %v2141_v34  ;;  %v2234_v34 = vld [vmem:[#allocation7 + $0x1a0] ss:$16 sps:$4 sm:$0xff]  }
  0x93   :  { %808 = vmatprep.subr.bf16.mxu0 %v2146_v35  ;;  %1301 = vmatpush1.bf16.msra.mxu1 %v2198_v10  ;;  %v2237_v35 = vld [vmem:[#allocation7 + $0x1a8] ss:$16 sps:$4 sm:$0xff]  }
  0x94   :  { %1302 = vmatprep.subr.bf16.mxu1 %v2206_v12 }
  0x96   :  { %809 = vmatpush1.bf16.msra.mxu0 %v2144_v36  ;;  %v2242_v36 = vld [vmem:[#allocation7 + $0x184] ss:$16 sps:$4 sm:$0xff]  }
  0x97   :  { %810 = vmatprep.subr.bf16.mxu0 %v2149_v37  ;;  %1303 = vmatpush1.bf16.msra.mxu1 %v2204_v14  ;;  %v2245_v37 = vld [vmem:[#allocation7 + $0x18c] ss:$16 sps:$4 sm:$0xff]  }
  0x98   :  { %1304 = vmatprep.subr.bf16.mxu1 %v2212_v16 }
  0x9a   :  { %811 = vmatpush2.bf16.msra.mxu0 %v2147_v38  ;;  %v2240_v38 = vld [vmem:[#allocation7 + $0x180] ss:$16 sps:$4 sm:$0xff]  }
  0x9b   :  { %812 = vmatprep.subr.bf16.mxu0 %v2152_v39  ;;  %1305 = vmatpush1.bf16.msra.mxu1 %v2210_v18  ;;  %v2243_v39 = vld [vmem:[#allocation7 + $0x188] ss:$16 sps:$4 sm:$0xff]  }
  0x9c   :  { %1306 = vmatprep.subr.bf16.mxu1 %v2218_v20 }
  0x9e   :  { %813 = vmatpush2.bf16.msra.mxu0 %v2150_v40  ;;  %v2248_v40 = vld [vmem:[#allocation7 + $0x164] ss:$16 sps:$4 sm:$0xff]  }
  0x9f   :  { %814 = vmatprep.subr.bf16.mxu0 %v2155_v41  ;;  %1307 = vmatpush1.bf16.msra.mxu1 %v2216_v22  ;;  %v2251_v41 = vld [vmem:[#allocation7 + $0x16c] ss:$16 sps:$4 sm:$0xff]  }
  0xa0   :  { %1308 = vmatprep.subr.bf16.mxu1 %v2224_v24 }
  0xa2   :  { %815 = vmatpush2.bf16.msra.mxu0 %v2153_v42  ;;  %v2246_v42 = vld [vmem:[#allocation7 + $0x160] ss:$16 sps:$4 sm:$0xff]  }
  0xa3   :  { %816 = vmatprep.subr.bf16.mxu0 %v2158_v43  ;;  %1309 = vmatpush2.bf16.msra.mxu1 %v2222_v26  ;;  %v2249_v43 = vld [vmem:[#allocation7 + $0x168] ss:$16 sps:$4 sm:$0xff]  }
  0xa4   :  { %1310 = vmatprep.subr.bf16.mxu1 %v2230_v28 }
  0xa6   :  { %817 = vmatpush2.bf16.msra.mxu0 %v2156_v44  ;;  %v2254_v44 = vld [vmem:[#allocation7 + $0x144] ss:$16 sps:$4 sm:$0xff]  }
  0xa7   :  { %818 = vmatprep.subr.bf16.mxu0 %v2161_v45  ;;  %1311 = vmatpush2.bf16.msra.mxu1 %v2228_v30  ;;  %v2257_v45 = vld [vmem:[#allocation7 + $0x14c] ss:$16 sps:$4 sm:$0xff]  }
  0xa8   :  { %1312 = vmatprep.subr.bf16.mxu1 %v2236_v32 }
  0xaa   :  { %819 = vmatpush2.bf16.msra.mxu0 %v2159_v46  ;;  %v2252_v46 = vld [vmem:[#allocation7 + $0x140] ss:$16 sps:$4 sm:$0xff]  }
  0xab   :  { %820 = vmatprep.subr.bf16.mxu0 %v2164_v47  ;;  %1313 = vmatpush2.bf16.msra.mxu1 %v2234_v34  ;;  %v2255_v47 = vld [vmem:[#allocation7 + $0x148] ss:$16 sps:$4 sm:$0xff]  }
  0xac   :  { %1314 = vmatprep.subr.bf16.mxu1 %v2242_v36 }
  0xae   :  { %821 = vmatpush2.bf16.msra.mxu0 %v2162_v48  ;;  %v2260_v48 = vld [vmem:[#allocation7 + $0x124] ss:$16 sps:$4 sm:$0xff]  }
  0xaf   :  { %822 = vmatprep.subr.bf16.mxu0 %v2167_v49  ;;  %1315 = vmatpush2.bf16.msra.mxu1 %v2240_v38  ;;  %v2263_v49 = vld [vmem:[#allocation7 + $0x12c] ss:$16 sps:$4 sm:$0xff]  }
  0xb0   :  { %1316 = vmatprep.subr.bf16.mxu1 %v2248_v40  ;;  %v2273_v40 = vld [vmem:[#allocation8 + $0x30] sm:$0xff]  }
  0xb2   :  { %823 = vmatpush2.bf16.msra.mxu0 %v2165_v50  ;;  %v2258_v50 = vld [vmem:[#allocation7 + $0x120] ss:$16 sps:$4 sm:$0xff]  }
  0xb3   :  { %824 = vmatprep.subr.bf16.mxu0 %v2173_v51  ;;  %1317 = vmatpush2.bf16.msra.mxu1 %v2246_v42  ;;  %v2261_v51 = vld [vmem:[#allocation7 + $0x128] ss:$16 sps:$4 sm:$0xff]  }
  0xb4   :  { %1318 = vmatprep.subr.bf16.mxu1 %v2254_v44  ;;  %v2275_v42 = vld [vmem:[#allocation8 + $0x28] sm:$0xff]   ;;  %v2277_v44 = vld [vmem:[#allocation8 + $0x20] sm:$0xff]  }
  0xb6   :  { %825 = vmatpush2.bf16.msra.mxu0 %v2171_v52  ;;  %v2266_v52 = vld [vmem:[#allocation7 + $0x104] ss:$16 sps:$4 sm:$0xff]  }
  0xb7   :  { %1335 = vmatprep.subr.bf16.mxu0 %v2179_v59  ;;  %1319 = vmatpush2.bf16.msra.mxu1 %v2252_v46  ;;  %v2479_v59 = vshrl.u32 %v204_v57, 7  ;;  %v2279_v46 = vld [vmem:[#allocation8 + $0x18] sm:$0xff]  }
  0xb8   :  { %1320 = vmatprep.subr.bf16.mxu1 %v2260_v48  ;;  %v2281_v48 = vld [vmem:[#allocation8 + $0x10] sm:$0xff]  }
  0xb9   :  { %827 = vmatmul.mubr.bf16.vlgmr.msra.gmra.mxu0 %v101_v55  ;;  %v2267_v55 = vld [vmem:[#allocation7 + $0x108] ss:$16 sps:$4 sm:$0xff]   ;;  %v210_v62 = vsub.s32 1, %v2479_v59  ;;  %v206_v0 = vsub.s32 0, %v2479_v59 }
  0xba   :  { %1336 = vmatpush1.bf16.msra.mxu0 %v2177_v58 }
  0xbb   :  { %1337 = vmatprep.subr.bf16.mxu0 %v2185_v61  ;;  %1321 = vmatpush2.bf16.msra.mxu1 %v2258_v50  ;;  %v2283_v50 = vld [vmem:[#allocation8 + $0x8] sm:$0xff]  }
  0xbc   :  { %1322 = vmatprep.subr.bf16.mxu1 %v2266_v52  ;;  %v2285_v52 = vld [vmem:[#allocation8] sm:$0xff]  }
  0xbe   :  { %1338 = vmatpush1.bf16.msra.mxu0 %v2183_v63  ;;  %v202_v63 = vld [vmem:[%s2510_s2] sm:$0x3] }
  0xbf   :  { %1339 = vmatprep.subr.bf16.mxu0 %v2191_v1  ;;  %1323 = vmatpush2.bf16.msra.mxu1 %v2264_v54  ;;  %v207_v4 = vrot.slane %v202_v63, %v206_v0  ;;  %v950_v54 = vld [vmem:[%s2512_s4] sm:$0xf] }
  0xc0   :  { %1969 = vmatprep.subr.bf16.mxu1 %v2270_v56 }
  0xc2   :  { %1340 = vmatpush1.bf16.msra.mxu0 %v2189_v3  ;;  %v211_v3 = vrot.slane %v202_v63, %v210_v62 }
  0xc3   :  { %1341 = vmatprep.subr.bf16.mxu0 %v2197_v5 }
  0xc6   :  { %1342 = vmatpush1.bf16.msra.mxu0 %v2195_v7 }
  0xc7   :  { %1343 = vmatprep.subr.bf16.mxu0 %v2203_v9 }
  0xca   :  { %1344 = vmatpush1.bf16.msra.mxu0 %v2201_v11 }
  0xcb   :  { %1345 = vmatprep.subr.bf16.mxu0 %v2209_v13 }
  0xce   :  { %1346 = vmatpush1.bf16.msra.mxu0 %v2207_v15 }
  0xcf   :  { %1347 = vmatprep.subr.bf16.mxu0 %v2215_v17 }
  0xd2   :  { %1348 = vmatpush1.bf16.msra.mxu0 %v2213_v19 }
  0xd3   :  { %1349 = vmatprep.subr.bf16.mxu0 %v2221_v21 }
  0xd6   :  { %1350 = vmatpush1.bf16.msra.mxu0 %v2219_v23 }
  0xd7   :  { %1351 = vmatprep.subr.bf16.mxu0 %v2227_v25 }
  0xda   :  { %1352 = vmatpush2.bf16.msra.mxu0 %v2225_v27 }
  0xdb   :  { %1353 = vmatprep.subr.bf16.mxu0 %v2233_v29 }
  0xde   :  { %1354 = vmatpush2.bf16.msra.mxu0 %v2231_v31 }
  0xdf   :  { %1355 = vmatprep.subr.bf16.mxu0 %v2239_v33 }
  0xe2   :  { %1356 = vmatpush2.bf16.msra.mxu0 %v2237_v35 }
  0xe3   :  { %1357 = vmatprep.subr.bf16.mxu0 %v2245_v37  ;;  %v2271_v37 = vld [vmem:[#allocation8 + $0x38] sm:$0xff]  }
  0xe6   :  { %1358 = vmatpush2.bf16.msra.mxu0 %v2243_v39  ;;  %v2272_v39 = vld [vmem:[#allocation8 + $0x70] sm:$0xff]  }
  0xe7   :  { %1359 = vmatprep.subr.bf16.mxu0 %v2251_v41  ;;  %v2274_v41 = vld [vmem:[#allocation8 + $0x68] sm:$0xff]  }
  0xea   :  { %1360 = vmatpush2.bf16.msra.mxu0 %v2249_v43  ;;  %v2276_v43 = vld [vmem:[#allocation8 + $0x60] sm:$0xff]  }
  0xeb   :  { %1361 = vmatprep.subr.bf16.mxu0 %v2257_v45  ;;  %v2278_v45 = vld [vmem:[#allocation8 + $0x58] sm:$0xff]  }
  0xee   :  { %1362 = vmatpush2.bf16.msra.mxu0 %v2255_v47  ;;  %v2280_v47 = vld [vmem:[#allocation8 + $0x50] sm:$0xff]  }
  0xef   :  { %1363 = vmatprep.subr.bf16.mxu0 %v2263_v49  ;;  %v2282_v49 = vld [vmem:[#allocation8 + $0x48] sm:$0xff]  }
  0xf2   :  { %1364 = vmatpush2.bf16.msra.mxu0 %v2261_v51  ;;  %v2284_v51 = vld [vmem:[#allocation8 + $0x40] sm:$0xff]  }
  0xf3   :  { %1365 = vmatprep.subr.bf16.mxu0 %v2269_v53  ;;  %v2286_v53 = vld [vmem:[#allocation8 + $0xf8] sm:$0xff]  }
  0xf6   :  { %1366 = vmatpush2.bf16.msra.mxu0 %v2267_v55  ;;  %v966_v55 = vsub.s32 3, %v2479_v59 }
 0x139   :  { %v742_v60 = vpop.f32.mrf.mxu0 }
 0x13a   :  { %v785_v58 = vpop.f32.mrf.mxu1  ;;  %v743_v9 = vadd.f32 %v742_v60, %v207_v4  ;;  %v955_v60 = vrot.slane %v950_v54, %v206_v0 }
 0x13b   :  { %v744_v1 = vpop.f32.mrf.mxu0 }
 0x13c   :  { %v787_v61 = vpop.f32.mrf.mxu1  ;;  %v745_v8 = vadd.f32 %v744_v1, %v211_v3  ;;  %v786_v16 = vadd.f32 %v785_v58, %v743_v9  ;;  %v959_v58 = vrot.slane %v950_v54, %v210_v62  ;;  %v967_v1 = vrot.slane %v950_v54, %v966_v55 }
 0x13d   :  { %v746_v5 = vpop.f32.mrf.mxu0 }
 0x13e   :  { %v789_v2 = vpop.f32.mrf.mxu1  ;;  %v747_v11 = vadd.f32 %v746_v5, %v207_v4  ;;  %v788_v14 = vadd.f32 %v787_v61, %v745_v8 }
 0x13f   :  { %v748_v10 = vpop.f32.mrf.mxu0 }
 0x140   :  { %v791_v6 = vpop.f32.mrf.mxu1  ;;  %v749_v15 = vadd.f32 %v748_v10, %v211_v3  ;;  %v790_v18 = vadd.f32 %v789_v2, %v747_v11 }
 0x142   :  { %v871_v7 = vpop.f32.mrf.mxu1  ;;  %v792_v23 = vadd.f32 %v791_v6, %v749_v15 }
 0x144   :  { %v873_v12 = vpop.f32.mrf.mxu1 }
 0x146   :  { %v875_v21 = vpop.f32.mrf.mxu1 }
 0x148   :  { %v877_v30 = vpop.f32.mrf.mxu1 }
 0x179   :  { %v828_v13 = vpop.f32.mrf.mxu0 }
 0x17a   :  { %v829_v20 = vadd.f32 %v828_v13, %v786_v16 }
 0x17b   :  { %v830_v17 = vpop.f32.mrf.mxu0 }
 0x17c   :  { %v831_v19 = vadd.f32 %v830_v17, %v788_v14  ;;  %v872_v29 = vadd.f32 %v871_v7, %v829_v20  ;;  %v2287_v17 = vld [vmem:[#allocation8 + $0xb8] sm:$0xff]  }
 0x17d   :  { %v832_v22 = vpop.f32.mrf.mxu0 }
 0x17e   :  { %v833_v24 = vadd.f32 %v832_v22, %v790_v18  ;;  %v874_v26 = vadd.f32 %v873_v12, %v831_v19  ;;  %v880_v35 = vmax.f32 %v872_v29, 0.0  ;;  %v2288_v19 = vld [vmem:[#allocation8 + $0xf0] sm:$0xff]   ;;  %v2290_v22 = vld [vmem:[#allocation8 + $0xe8] sm:$0xff]   ;;  %v962_v29 = vsub.s32 2, %v2479_v59 }
 0x17f   :  { %v834_v25 = vpop.f32.mrf.mxu0 }
 0x180   :  { %v876_v27 = vadd.f32 %v875_v21, %v833_v24  ;;  %v835_v28 = vadd.f32 %v834_v25, %v792_v23  ;;  %v881_v33 = vmax.f32 %v874_v26, 0.0  ;;  %v2289_v21 = vld [vmem:[#allocation8 + $0xb0] sm:$0xff]   ;;  %v2291_v23 = vld [vmem:[#allocation8 + $0xa8] sm:$0xff]   ;;  %v2292_v24 = vld [vmem:[#allocation8 + $0xe0] sm:$0xff]  }
 0x181   :  { %v2293_v25 = vld [vmem:[#allocation8 + $0xa0] sm:$0xff]   ;;  %v2294_v26 = vld [vmem:[#allocation8 + $0xd8] sm:$0xff]  }
 0x182   :  { %v878_v31 = vadd.f32 %v877_v30, %v835_v28  ;;  %v882_v32 = vmax.f32 %v876_v27, 0.0  ;;  %v2295_v27 = vld [vmem:[#allocation8 + $0x98] sm:$0xff]   ;;  %v2296_v28 = vld [vmem:[#allocation8 + $0xd0] sm:$0xff]  }
 0x183   :  { %v2297_v30 = vld [vmem:[#allocation8 + $0x90] sm:$0xff]  }
 0x184   :  { %v883_v34 = vmax.f32 %v878_v31, 0.0  ;;  %v884_v38 = vpack.c.bf16 %v882_v32, %v880_v35  ;;  %v2298_v31 = vld [vmem:[#allocation8 + $0xc8] sm:$0xff]   ;;  %v963_v32 = vrot.slane %v950_v54, %v962_v29  ;;  %v2300_v35 = vld [vmem:[#allocation8 + $0xc0] sm:$0xff]  }
 0x186   :  { %v885_v36 = vpack.c.bf16 %v883_v34, %v881_v33  ;;  %v2299_v33 = vld [vmem:[#allocation8 + $0x88] sm:$0xff]  }
 0x188   :  { %1324 = vmatprep.mubr.bf16.mxu1 %v885_v36  ;;  %1367 = vmatprep.mubr.bf16.mxu0 %v885_v36 }
 0x189   :  { %1325 = vmatmul.mubr.bf16.vlgmr.msra.gmra.mxu1 %v884_v38  ;;  %1368 = vmatmul.mubr.bf16.vlgmr.msra.gmra.mxu0 %v884_v38 }
 0x18a   :  { %1970 = vmatpush3.bf16.msra.mxu1 %v2271_v37  ;;  %v2301_v37 = vld [vmem:[#allocation8 + $0x80] sm:$0xff]  }
 0x18b   :  { %1971 = vmatprep.subr.bf16.mxu1 %v2272_v39 }
 0x18e   :  { %1972 = vmatpush3.bf16.msra.mxu1 %v2273_v40 }
 0x18f   :  { %1973 = vmatprep.subr.bf16.mxu1 %v2274_v41 }
 0x192   :  { %1974 = vmatpush3.bf16.msra.mxu1 %v2275_v42 }
 0x193   :  { %1975 = vmatprep.subr.bf16.mxu1 %v2276_v43 }
 0x196   :  { %1976 = vmatpush3.bf16.msra.mxu1 %v2277_v44 }
 0x197   :  { %1977 = vmatprep.subr.bf16.mxu1 %v2278_v45 }
 0x19a   :  { %1978 = vmatpush3.bf16.msra.mxu1 %v2279_v46 }
 0x19b   :  { %1979 = vmatprep.subr.bf16.mxu1 %v2280_v47 }
 0x19e   :  { %1980 = vmatpush3.bf16.msra.mxu1 %v2281_v48  ;;  %v1927_v48 = vld [vmem:[%s2514_s6] ss:$0 sm:$0xff] }
 0x19f   :  { %1981 = vmatprep.subr.bf16.mxu1 %v2282_v49 }
 0x1a2   :  { %1982 = vmatpush3.bf16.msra.mxu1 %v2283_v50 }
 0x1a3   :  { %1983 = vmatprep.subr.bf16.mxu1 %v2284_v51 }
 0x1a6   :  { %1984 = vmatpush3.bf16.msra.mxu1 %v2285_v52 }
 0x1a7   :  { %1991 = vmatprep.subr.bf16.mxu1 %v2286_v53 }
 0x249   :  { %v1326_v56 = vpop.f32.mrf.mxu1  ;;  %v1369_v57 = vpop.f32.mrf.mxu0 }
 0x24a   :  { %v1327_v6 = vadd.f32 %v1326_v56, %v955_v60  ;;  %v1370_v36 = vadd.f32 %v1369_v57, %v963_v32 }
 0x24b   :  { %v1328_v61 = vpop.f32.mrf.mxu1  ;;  %v1371_v63 = vpop.f32.mrf.mxu0 }
 0x24c   :  { %v1329_v4 = vadd.f32 %v1328_v61, %v959_v58  ;;  %v1372_v9 = vadd.f32 %v1371_v63, %v967_v1  ;;  %v1378_v15 = vmax.f32 %v1327_v6, 0.0  ;;  %v1380_v39 = vmax.f32 %v1370_v36, 0.0 }
 0x24d   :  { %v1330_v2 = vpop.f32.mrf.mxu1  ;;  %v1373_v3 = vpop.f32.mrf.mxu0 }
 0x24e   :  { %v1331_v5 = vadd.f32 %v1330_v2, %v955_v60  ;;  %v1379_v13 = vmax.f32 %v1329_v4, 0.0  ;;  %v1381_v16 = vmax.f32 %v1372_v9, 0.0  ;;  %v1374_v34 = vadd.f32 %v1373_v3, %v963_v32 }
 0x24f   :  { %v1332_v7 = vpop.f32.mrf.mxu1  ;;  %v1375_v8 = vpop.f32.mrf.mxu0 }
 0x250   :  { %v1333_v10 = vadd.f32 %v1332_v7, %v959_v58  ;;  %v1376_v11 = vadd.f32 %v1375_v8, %v967_v1  ;;  %v1382_v12 = vmax.f32 %v1331_v5, 0.0  ;;  %v1384_v38 = vmax.f32 %v1374_v34, 0.0 }
 0x252   :  { %v1383_v14 = vmax.f32 %v1333_v10, 0.0  ;;  %v1385_v62 = vmax.f32 %v1376_v11, 0.0  ;;  %v1386_v18 = vpack.c.bf16 %v1382_v12, %v1378_v15  ;;  %v1388_v40 = vpack.c.bf16 %v1384_v38, %v1380_v39 }
 0x254   :  { %v1387_v0 = vpack.c.bf16 %v1383_v14, %v1379_v13  ;;  %v1389_v20 = vpack.c.bf16 %v1385_v62, %v1381_v16 }
 0x256   :  { %1685 = vmatprep.mubr.bf16.mxu1 %v1387_v0 }
 0x257   :  { %1686 = vmatmul.mubr.bf16.vlgmr.msra.gmra.mxu1 %v1386_v18 }
 0x258   :  { %1992 = vmatpush3.bf16.msra.mxu1 %v2287_v17  ;;  %1726 = vmatprep.mubr.bf16.mxu1 %v1389_v20 }
 0x259   :  { %1993 = vmatprep.subr.bf16.mxu1 %v2288_v19 }
 0x25c   :  { %1994 = vmatpush3.bf16.msra.mxu1 %v2289_v21 }
 0x25d   :  { %1995 = vmatprep.subr.bf16.mxu1 %v2290_v22 }
 0x260   :  { %1996 = vmatpush3.bf16.msra.mxu1 %v2291_v23 }
 0x261   :  { %1997 = vmatprep.subr.bf16.mxu1 %v2292_v24 }
 0x264   :  { %1998 = vmatpush3.bf16.msra.mxu1 %v2293_v25 }
 0x265   :  { %1999 = vmatprep.subr.bf16.mxu1 %v2294_v26 }
 0x268   :  { %2000 = vmatpush3.bf16.msra.mxu1 %v2295_v27 }
 0x269   :  { %2001 = vmatprep.subr.bf16.mxu1 %v2296_v28 }
 0x26c   :  { %2002 = vmatpush3.bf16.msra.mxu1 %v2297_v30 }
 0x26d   :  { %2003 = vmatprep.subr.bf16.mxu1 %v2298_v31 }
 0x270   :  { %2004 = vmatpush3.bf16.msra.mxu1 %v2299_v33 }
 0x271   :  { %2005 = vmatprep.subr.bf16.mxu1 %v2300_v35 }
 0x274   :  { %2006 = vmatpush3.bf16.msra.mxu1 %v2301_v37 }
 0x277   :  { %1727 = vmatmul.mubr.bf16.vlgmr.msra.gmra.mxu1 %v1388_v40 }
 0x317   :  { %v1985_v59 = vpop.f32.mrf.mxu1 }
 0x319   :  { %v1986_v41 = vpop.f32.mrf.mxu1 }
 0x31a   :  { %v1987_v46 = vadd.f32 %v1986_v41, %v1985_v59 }
 0x31b   :  { %v1988_v42 = vpop.f32.mrf.mxu1 }
 0x31c   :  { %v1688_v52 = vadd.f32 %v1987_v46, %v1927_v48 }
 0x31d   :  { %v1989_v43 = vpop.f32.mrf.mxu1 }
 0x31e   :  { %v1990_v47 = vadd.f32 %v1989_v43, %v1988_v42 }
 0x320   :  { %v1691_v53 = vadd.f32 %v1990_v47, %v1927_v48 }
 0x337   :  { %v2007_v44 = vpop.f32.mrf.mxu1 }
 0x339   :  { %v2008_v45 = vpop.f32.mrf.mxu1 }
 0x33a   :  { %v2009_v50 = vadd.f32 %v2008_v45, %v2007_v44 }
 0x33b   :  { %v2010_v49 = vpop.f32.mrf.mxu1 }
 0x33c   :  { %v1729_v55 = vadd.f32 %v2009_v50, %v1688_v52 }
 0x33d   :  { %v2011_v51 = vpop.f32.mrf.mxu1 }
 0x33e   :  { %v2012_v54 = vadd.f32 %v2011_v51, %v2010_v49 }
 0x340   :  { %v1732_v56 = vadd.f32 %v2012_v54, %v1691_v53 }
 0x342   :  { %v1967_v57 = vpack.c.bf16 %v1732_v56, %v1729_v55 }
 0x344   :  { %1968 = vst [vmem:[#allocation10] sm:$0xff] %v1967_v57  }
 0x345   :  { %2393 = shalt.err (!%p2390_p10)
}
 0x346   :  { %1756 = dma.vmem_to_hbm [thread:$0]  %s1751_s30, 128, %s2515_s7, [#allocation4], %s2420_s23, %s2420_s23, %s2421_s24  }
 0x347   :  { %2408 = dma.done.wait [#allocation4], 128  }
 0x348   :  { %2409 = vsyncadd [#allocation4], 4294967168 }
 0x349   :  { %1760 = vsyncpa [#allocation3], 1 }
 0x34a   :  { %1761 = vsyncpa [#allocation6], 1 }
 0x34b   :  { %1762 = vsyncpa [#allocation9], 1 }
 0x34c   :  { %1763 = vsyncpa [#allocation4], 1 }

</bundles_post_ra>
